<compile_context>
chip_gen: v7x
topology: tpu7x:2x2x1
jax: 0.10.0
libtpu: 0.0.40
codegen_flags: <defaults>
</compile_context>

<pallas_src>
import jax
import jax.numpy as jnp
from jax.experimental import pallas as pl
from jax.experimental.pallas import tpu as pltpu


def _round_up(x: int, m: int) -> int:
    return ((x + m - 1) // m) * m


# ----------------------------------------------------------------------------
# Fused kernel: embedding gather (one-hot MXU matmul) + FM interaction
# ----------------------------------------------------------------------------
def _fused_embed_fm_kernel(ids_ref, rhs_ref, out_ref):
    # ids_ref : (Bt, F)    int32 feature ids for this batch tile.
    # rhs_ref : (V, D+1)   [table | row_sum(table^2)] — constant index_map keeps
    #                      it VMEM-resident across all grid steps (fetched once).
    # out_ref : (1, Bt)    lane-dense FM output for this batch tile.
    ids = ids_ref[...]                                   # (Bt, F) int32
    rhs = rhs_ref[...]                                   # native dtype, no upcast
    bt, num_fields = ids.shape
    vocab, d_plus_1 = rhs.shape
    d = d_plus_1 - 1

    # One-hot field counts: counts[b, v] = #fields of row b equal to v.
    # Accumulated in int32 on the VPU; iota hoisted out of the unrolled loop;
    # single cast to the matmul dtype after the loop.
    iota_v = jax.lax.broadcasted_iota(jnp.int32, (bt, vocab), 1)
    counts = jnp.zeros((bt, vocab), jnp.int32)
    for f in range(num_fields):
        counts = counts + (ids[:, f:f + 1] == iota_v).astype(jnp.int32)

    # Single MXU matmul with the squared-term reduction folded into the RHS:
    #   out[:, :D] = sum_f e_f            (= counts @ table)
    #   out[:,  D] = sum_f sum_d e_f[d]^2 (= counts @ row_sum(table^2))
    out = jnp.dot(counts.astype(rhs.dtype), rhs,
                  preferred_element_type=jnp.float32)    # (Bt, D+1) f32 acc

    s = out[:, :d]                                       # (Bt, D)
    sq_sum = out[:, d]                                   # (Bt,)
    fm = 0.5 * (jnp.sum(s * s, axis=-1) - sq_sum)        # (Bt,)
    out_ref[...] = fm.reshape(1, bt)                     # lane-dense store


def _rhs_block_spec(vocab: int, width: int) -> pl.BlockSpec:
    # Constant index_map => block never changes; Buffered(1) avoids reserving a
    # useless second VMEM buffer for the table (binding constraint on v7x/v5e).
    try:
        return pl.BlockSpec((vocab, width), lambda i: (0, 0),
                            pipeline_mode=pl.Buffered(1))
    except TypeError:  # older jax without pipeline_mode on BlockSpec
        return pl.BlockSpec((vocab, width), lambda i: (0, 0))


def _vmem_estimate_bytes(bt, vocab, num_fields, embed_dim, rhs_itemsize) -> int:
    counts_bytes = bt * vocab * 4 * 3            # int32 counts + iota + cast copy
    rhs_bytes = vocab * (embed_dim + 1) * rhs_itemsize   # single-buffered
    ids_bytes = bt * num_fields * 4 * 2          # double-buffered
    out_bytes = bt * 4 * 2 + bt * (embed_dim + 1) * 4
    return counts_bytes + rhs_bytes + ids_bytes + out_bytes


def basic_model_forward(table: jax.Array, sparse_input: jax.Array,
                        *, batch_tile: int = 512) -> jax.Array:
    """table: [V, D] (f32 or bf16), sparse_input: [B, F] int -> predict [B, 1] f32."""
    B, F = sparse_input.shape
    V, D = table.shape

    # ---- Hoisted table prep (once per call, outside the tile loop) ----------
    # rhs = [table | row_sum(table*table)] in the table's own dtype (bf16 tables
    # keep the single-pass MXU path; the extra column is exact in f32 first).
    tbl_f32 = table.astype(jnp.float32)
    sq_col = jnp.sum(tbl_f32 * tbl_f32, axis=1, keepdims=True)       # (V, 1)
    rhs = jnp.concatenate([tbl_f32, sq_col], axis=1).astype(table.dtype)  # (V, D+1)

    # ---- Batch tiling --------------------------------------------------------
    # Large B: lane-aligned tile (multiple of 128), VMEM-clamped.  Small B: a
    # single block of round_up(B, 8) rows (legal: block == full array dims), so
    # a B=4 call does not pay for 124 padded rows.
    if B >= batch_tile:
        bt = batch_tile
        while bt > 128 and _vmem_estimate_bytes(bt, V, F, D, rhs.dtype.itemsize) > 28 * 2**20:
            bt //= 2
        b_pad = _round_up(B, bt)
    else:
        bt = _round_up(B, 8)
        b_pad = bt

    ids = sparse_input.astype(jnp.int32)
    if b_pad != B:
        ids = jnp.pad(ids, ((0, b_pad - B), (0, 0)))   # padded rows -> id 0, sliced off

    vmem_limit = int(min(64 * 2**20,
                         max(16 * 2**20,
                             2 * _vmem_estimate_bytes(bt, V, F, D, rhs.dtype.itemsize))))

    out = pl.pallas_call(
        _fused_embed_fm_kernel,
        out_shape=jax.ShapeDtypeStruct((1, b_pad), jnp.float32),
        grid=(b_pad // bt,),
        in_specs=[
            pl.BlockSpec((bt, F), lambda i: (i, 0)),   # batch tile of ids
            _rhs_block_spec(V, D + 1),                 # whole [table | sqsum], VMEM-resident
        ],
        out_specs=pl.BlockSpec((1, bt), lambda i: (0, i)),  # lane-dense output
        compiler_params=pltpu.CompilerParams(
            dimension_semantics=("parallel",),         # batch axis: megacore split
            vmem_limit_bytes=vmem_limit,
        ),
    )(ids, rhs)

    return out[0, :B].reshape(B, 1)


# ----------------------------------------------------------------------------
# BasicModel forward
# ----------------------------------------------------------------------------
class BasicModelPallas:
    def __init__(self, vocab_size: int, num_fields: int, embed_dim: int, key,
                 dtype=jnp.float32):
        # Deterministic parameter init (stands in for nn.Embedding.weight).
        self.table = (
            jax.random.normal(key, (vocab_size, embed_dim), dtype=jnp.float32) * 0.05
        ).astype(dtype)
        self.num_fields = num_fields

    def __call__(self, sparse_input: jax.Array, dense_input=None):
        # dense_input ([B, F, D] gathered embeddings) is fused away: it is never
        # materialized in HBM; gather + FeatureInteraction run in one kernel.
        return basic_model_forward(self.table, sparse_input)


if __name__ == "__main__":
    key = jax.random.PRNGKey(0)
    k_tbl, k_ids = jax.random.split(key)

    B, F, V, D = 4, 8, 64, 32
    model = BasicModelPallas(vocab_size=V, num_fields=F, embed_dim=D, key=k_tbl)

    sparse_input = jax.random.randint(k_ids, (B, F), 0, V, dtype=jnp.int32)

    predict = model(sparse_input)
    jax.block_until_ready(predict)

    # Pure-JAX reference of the same semantics (elementwise gather + FM).
    emb_ref = model.table.astype(jnp.float32)[sparse_input]       # [B, F, D]
    s_ref = emb_ref.sum(axis=1)
    sq_ref = (emb_ref * emb_ref).sum(axis=1)
    ref = 0.5 * (s_ref * s_ref - sq_ref).sum(axis=-1, keepdims=True)

    assert predict.shape == (B, 1)
    # Tolerance covers the multi-pass bf16 lowering of the f32 MXU matmul on
    # v5e/v6e/v7x (bf16 tables take the exact single-pass path).
    assert jnp.allclose(predict, ref, rtol=2e-3, atol=1e-3), "mismatch vs reference"

    print("KERNEL_OK")
</pallas_src>

<mosaic_0001>
module attributes {stable_mosaic.version = 11 : i64} {
  func.func @_fused_embed_fm_kernel(%arg0: i32, %arg1: memref<8x8xi32, #tpu.memory_space<vmem>>, %arg2: memref<64x33xf32, #tpu.memory_space<vmem>>, %arg3: memref<1x8xf32, #tpu.memory_space<vmem>>) attributes {dimension_semantics = [#tpu.dimension_semantics<parallel>], iteration_bounds = array<i64: 1>, scalar_prefetch = 0 : i64, scratch_operands = 0 : i64, tpu.core_type = #tpu.core_type<tc>, window_params = [{transform_indices = @transform_0, window_bounds = array<i64: 8, 8>}, {pipeline_mode = #tpu.pipeline_mode<synchronous>, transform_indices = @transform_1, window_bounds = array<i64: 64, 33>}, {transform_indices = @transform_2, window_bounds = array<i64: 1, 8>}]} {
    %c0 = arith.constant 0 : index
    %c0_0 = arith.constant 0 : index
    %0 = vector.load %arg1[%c0, %c0_0] : memref<8x8xi32, #tpu.memory_space<vmem>>, vector<8x8xi32>
    %c0_1 = arith.constant 0 : index
    %c0_2 = arith.constant 0 : index
    %1 = vector.load %arg2[%c0_1, %c0_2] : memref<64x33xf32, #tpu.memory_space<vmem>>, vector<64x33xf32>
    %2 = tpu.iota {dimensions = array<i32: 1>} : vector<8x64xi32>
    %c0_i32 = arith.constant 0 : i32
    %3 = vector.broadcast %c0_i32 : i32 to vector<8x64xi32>
    %4 = vector.extract_strided_slice %0 {offsets = [0, 0], sizes = [8, 1], strides = [1, 1]} : vector<8x8xi32> to vector<8x1xi32>
    %5 = vector.broadcast %4 : vector<8x1xi32> to vector<8x64xi32>
    %6 = arith.cmpi eq, %5, %2 : vector<8x64xi32>
    %7 = arith.extui %6 : vector<8x64xi1> to vector<8x64xi32>
    %8 = arith.addi %3, %7 : vector<8x64xi32>
    %9 = vector.extract_strided_slice %0 {offsets = [0, 1], sizes = [8, 1], strides = [1, 1]} : vector<8x8xi32> to vector<8x1xi32>
    %10 = vector.broadcast %9 : vector<8x1xi32> to vector<8x64xi32>
    %11 = arith.cmpi eq, %10, %2 : vector<8x64xi32>
    %12 = arith.extui %11 : vector<8x64xi1> to vector<8x64xi32>
    %13 = arith.addi %8, %12 : vector<8x64xi32>
    %14 = vector.extract_strided_slice %0 {offsets = [0, 2], sizes = [8, 1], strides = [1, 1]} : vector<8x8xi32> to vector<8x1xi32>
    %15 = vector.broadcast %14 : vector<8x1xi32> to vector<8x64xi32>
    %16 = arith.cmpi eq, %15, %2 : vector<8x64xi32>
    %17 = arith.extui %16 : vector<8x64xi1> to vector<8x64xi32>
    %18 = arith.addi %13, %17 : vector<8x64xi32>
    %19 = vector.extract_strided_slice %0 {offsets = [0, 3], sizes = [8, 1], strides = [1, 1]} : vector<8x8xi32> to vector<8x1xi32>
    %20 = vector.broadcast %19 : vector<8x1xi32> to vector<8x64xi32>
    %21 = arith.cmpi eq, %20, %2 : vector<8x64xi32>
    %22 = arith.extui %21 : vector<8x64xi1> to vector<8x64xi32>
    %23 = arith.addi %18, %22 : vector<8x64xi32>
    %24 = vector.extract_strided_slice %0 {offsets = [0, 4], sizes = [8, 1], strides = [1, 1]} : vector<8x8xi32> to vector<8x1xi32>
    %25 = vector.broadcast %24 : vector<8x1xi32> to vector<8x64xi32>
    %26 = arith.cmpi eq, %25, %2 : vector<8x64xi32>
    %27 = arith.extui %26 : vector<8x64xi1> to vector<8x64xi32>
    %28 = arith.addi %23, %27 : vector<8x64xi32>
    %29 = vector.extract_strided_slice %0 {offsets = [0, 5], sizes = [8, 1], strides = [1, 1]} : vector<8x8xi32> to vector<8x1xi32>
    %30 = vector.broadcast %29 : vector<8x1xi32> to vector<8x64xi32>
    %31 = arith.cmpi eq, %30, %2 : vector<8x64xi32>
    %32 = arith.extui %31 : vector<8x64xi1> to vector<8x64xi32>
    %33 = arith.addi %28, %32 : vector<8x64xi32>
    %34 = vector.extract_strided_slice %0 {offsets = [0, 6], sizes = [8, 1], strides = [1, 1]} : vector<8x8xi32> to vector<8x1xi32>
    %35 = vector.broadcast %34 : vector<8x1xi32> to vector<8x64xi32>
    %36 = arith.cmpi eq, %35, %2 : vector<8x64xi32>
    %37 = arith.extui %36 : vector<8x64xi1> to vector<8x64xi32>
    %38 = arith.addi %33, %37 : vector<8x64xi32>
    %39 = vector.extract_strided_slice %0 {offsets = [0, 7], sizes = [8, 1], strides = [1, 1]} : vector<8x8xi32> to vector<8x1xi32>
    %40 = vector.broadcast %39 : vector<8x1xi32> to vector<8x64xi32>
    %41 = arith.cmpi eq, %40, %2 : vector<8x64xi32>
    %42 = arith.extui %41 : vector<8x64xi1> to vector<8x64xi32>
    %43 = arith.addi %38, %42 : vector<8x64xi32>
    %44 = arith.sitofp %43 : vector<8x64xi32> to vector<8x64xf32>
    %cst = arith.constant dense<0.000000e+00> : vector<8x33xf32>
    %45 = tpu.matmul %44, %1, %cst {dimension_numbers = #tpu.dot_dimension_numbers<[1], [0], [0], [1], [0, 0, 1, 1], [], []>} : vector<8x64xf32>, vector<64x33xf32>, vector<8x33xf32> -> vector<8x33xf32>
    %46 = vector.extract_strided_slice %45 {offsets = [0, 0], sizes = [8, 32], strides = [1, 1]} : vector<8x33xf32> to vector<8x32xf32>
    %47 = vector.extract_strided_slice %45 {offsets = [0, 32], sizes = [8, 1], strides = [1, 1]} : vector<8x33xf32> to vector<8x1xf32>
    %48 = vector.shape_cast %47 : vector<8x1xf32> to vector<8xf32>
    %49 = arith.mulf %46, %46 : vector<8x32xf32>
    %cst_3 = arith.constant dense<0.000000e+00> : vector<8xf32>
    %50 = vector.multi_reduction <add>, %49, %cst_3 [1] : vector<8x32xf32> to vector<8xf32>
    %51 = arith.subf %50, %48 : vector<8xf32>
    %cst_4 = arith.constant 5.000000e-01 : f32
    %52 = vector.broadcast %cst_4 : f32 to vector<8xf32>
    %53 = arith.mulf %52, %51 : vector<8xf32>
    %54 = vector.shape_cast %53 : vector<8xf32> to vector<1x8xf32>
    %c0_5 = arith.constant 0 : index
    %c0_6 = arith.constant 0 : index
    %55 = vector.load %arg3[%c0_5, %c0_6] : memref<1x8xf32, #tpu.memory_space<vmem>>, vector<1x8xf32>
    tpu.vector_store %arg3[%c0_5, %c0_6], %54 {strides = array<i32>} : memref<1x8xf32, #tpu.memory_space<vmem>>, vector<1x8xf32>,
    return
  }
  func.func @transform_0(%arg0: i32) -> (i32, i32) {
    %c0_i32 = arith.constant 0 : i32
    %c0_i32_0 = arith.constant 0 : i32
    return %arg0, %c0_i32 : i32, i32
  }
  func.func @transform_1(%arg0: i32) -> (i32, i32) {
    %c0_i32 = arith.constant 0 : i32
    %c0_i32_0 = arith.constant 0 : i32
    %c0_i32_1 = arith.constant 0 : i32
    return %c0_i32, %c0_i32_0 : i32, i32
  }
  func.func @transform_2(%arg0: i32) -> (i32, i32) {
    %c0_i32 = arith.constant 0 : i32
    %c0_i32_0 = arith.constant 0 : i32
    return %c0_i32, %arg0 : i32, i32
  }
}

</mosaic_0001>

<bundles_post_ra>
// kernel: tpu_custom_call.1
= control target key start
LH: loop header
LB: loop body
LE: loop exit
PB: predicated region body
PF: predicated region fallthrough
CT: control target
= control target key end

     0   :  { %v265_v1 = vmov 2   ;;  %v266_v2 = vmov 0   ;;  %s341_s0 = inlined_call_operand.vmem [shape: s32[8,8], index: 0, kind: input, shape index: {}]   ;;  %s342_s1 = inlined_call_operand.vmem [shape: f32[64,33], index: 1, kind: input, shape index: {}]   ;;  %s343_s2 = inlined_call_operand.hbm [shape: f32[1,8], index: 2, kind: output, shape index: {}]  }
   0x1   :  { %v12_v0 = vld [vmem:[%s341_s0] sm:$0xff]  ;;  %233 = vset.pattern.permute.xlu1 %v265_v1  ;;  %231 = vset.pattern.permute.xlu0 %v266_v2 }
   0x2   :  { %7 = vsyncpa [#allocation3], 0  ;;  %35 = vperm.xlu1 %233, %v12_v0   ;;  %24 = vperm.xlu0 %231, %v12_v0   ;;  %v267_v3 = vmov 3   ;;  %v268_v4 = vmov 1   ;;  %v13_v5 = vld [vmem:[%s342_s1] sm:$0xff]  ;;  %v14_v6 = vld [vmem:[%s342_s1 + $0x8] sm:$0xff]  ;;  %v21_v23 = vlaneseq }
   0x3   :  { %v269_v7 = vmov 4   ;;  %v270_v8 = vmov 5   ;;  %v207_v9 = vpack.c.bf16 %v14_v6, %v13_v5  ;;  %v271_v10 = vmov 0.0|0.0   ;;  %v15_v11 = vld [vmem:[%s342_s1 + $0x10] sm:$0xff]  ;;  %v16_v12 = vld [vmem:[%s342_s1 + $0x18] sm:$0xff]  ;;  %v17_v15 = vld [vmem:[%s342_s1 + $0x20] sm:$0xff] }
   0x4   :  { %206 = vmatprep.subr.bf16.mxu0 %v271_v10  ;;  %v210_v13 = vpack.c.bf16 %v16_v12, %v15_v11  ;;  %v272_v14 = vmov 6   ;;  %v18_v16 = vld [vmem:[%s342_s1 + $0x28] sm:$0xff]  ;;  %v273_v18 = vmov 7   ;;  %v19_v19 = vld [vmem:[%s342_s1 + $0x30] sm:$0xff]  ;;  %v20_v20 = vld [vmem:[%s342_s1 + $0x38] sm:$0xff]  ;;  %vm274_vm0 = vmmov 0  }
   0x5   :  { %208 = vmatpush3.bf16.msra.mxu0 %v207_v9  ;;  %v213_v17 = vpack.c.bf16 %v18_v16, %v17_v15  ;;  %v216_v21 = vpack.c.bf16 %v20_v20, %v19_v19  ;;  %v275_v22 = vmov 0.0   ;;  %v22_v26 = vand.u32 127, %v21_v23  ;;  %s277_s1 = smov [#allocation2]  }
   0x6   :  { %234 = vset.pattern.permute.xlu1 %v267_v3  ;;  %232 = vset.pattern.permute.xlu0 %v268_v4  ;;  %vm71_vm9 = vcmask 523264   ;;  %vm146_vm10 = vcmask 261120   ;;  %v276_v53 = vmov 32   ;;  %v157_v57 = vshrl.u32 %v21_v23, 7  ;;  %s169_s26 = sshll.u32 %s277_s1, 4  ;;  %s170_s26 = int_to_ptr.vmem [resolvable:$true] %s169_s26 }
   0x7   :  { %41 = vperm.xlu1 %234, %v12_v0   ;;  %29 = vperm.xlu0 %232, %v12_v0   ;;  %vm161_vm11 = vcmask 57344   ;;  %s241_s27 = scalar_lea.vmem %s170_s26, 16  ;;  %s245_s28 = scalar_lea.vmem %s170_s26, 32 }
   0x8   :  { %209 = vmatprep.subr.bf16.mxu0 %v271_v10  ;;  %203 = vmatprep.mubr.msk.f32.mxu0 %vm274_vm0, %v275_v22  ;;  %v158_v58 = vsub.s32 %v22_v26, %v157_v57  ;;  %p242_p0 = scmp.ne.s32.totalorder %s170_s26, %s241_s27  ;;  %p246_p1 = scmp.lt.s32.totalorder %s170_s26, %s170_s26 }
   0x9   :  { %211 = vmatpush3.bf16.msra.mxu0 %v210_v13  ;;  %p247_p2 = scmp.lt.s32.totalorder %s245_s28, %s241_s27 }
   0xa   :  { %212 = vmatprep.subr.bf16.mxu0 %v271_v10 }
   0xb   :  { %235 = vset.pattern.permute.xlu1 %v269_v7  ;;  %236 = vset.pattern.permute.xlu0 %v270_v8  ;;  %p248_p3 = por %p247_p2, %p246_p1 }
   0xc   :  { %47 = vperm.xlu1 %235, %v12_v0   ;;  %53 = vperm.xlu0 %236, %v12_v0  }
   0xd   :  { %214 = vmatpush3.bf16.msra.mxu0 %v213_v17  ;;  %p249_p4 = pnand %p248_p3, %p242_p0 }
   0xe   :  { %215 = vmatprep.subr.bf16.mxu0 %v271_v10 }
  0x10   :  { %237 = vset.pattern.permute.xlu1 %v272_v14  ;;  %240 = vset.pattern.permute.xlu0 %v276_v53 }
  0x11   :  { %59 = vperm.xlu1 %237, %v12_v0   ;;  %217 = vmatpush3.bf16.msra.mxu0 %v216_v21 }
  0x15   :  { %238 = vset.pattern.permute.xlu1 %v273_v18 }
  0x16   :  { %65 = vperm.xlu1 %238, %v12_v0  }
  0x1a   :  { %239 = vset.pattern.permute.xlu1 %v276_v53 }
  0x81   :  { %v36_v24 = vpop.permute.xlu1 %35  ;;  %v25_v25 = vpop.permute.xlu0 %24 }
  0x82   :  { %vm26_vm1 = vcmp.eq.s32.totalorder %v25_v25, %v22_v26  ;;  %vm37_vm2 = vcmp.eq.s32.totalorder %v36_v24, %v22_v26 }
  0x83   :  { %v27_v29 = vsel %vm26_vm1, 1, %v266_v2  ;;  %v38_v32 = vsel %vm37_vm2, 1, %v266_v2 }
  0x86   :  { %v42_v27 = vpop.permute.xlu1 %41  ;;  %v30_v28 = vpop.permute.xlu0 %29 }
  0x87   :  { %vm31_vm3 = vcmp.eq.s32.totalorder %v30_v28, %v22_v26  ;;  %vm43_vm4 = vcmp.eq.s32.totalorder %v42_v27, %v22_v26 }
  0x88   :  { %v32_v30 = vsel %vm31_vm3, 1, %v266_v2  ;;  %v44_v36 = vsel %vm43_vm4, 1, %v266_v2 }
  0x89   :  { %v33_v31 = vadd.s32 %v32_v30, %v27_v29 }
  0x8b   :  { %v39_v33 = vadd.s32 %v38_v32, %v33_v31  ;;  %v48_v34 = vpop.permute.xlu1 %47  ;;  %v54_v35 = vpop.permute.xlu0 %53 }
  0x8c   :  { %vm49_vm5 = vcmp.eq.s32.totalorder %v48_v34, %v22_v26  ;;  %vm55_vm6 = vcmp.eq.s32.totalorder %v54_v35, %v22_v26 }
  0x8d   :  { %v45_v37 = vadd.s32 %v44_v36, %v39_v33  ;;  %v50_v38 = vsel %vm49_vm5, 1, %v266_v2  ;;  %v56_v40 = vsel %vm55_vm6, 1, %v266_v2 }
  0x8f   :  { %v51_v39 = vadd.s32 %v50_v38, %v45_v37 }
  0x90   :  { %v60_v41 = vpop.permute.xlu1 %59 }
  0x91   :  { %vm61_vm7 = vcmp.eq.s32.totalorder %v60_v41, %v22_v26  ;;  %v57_v42 = vadd.s32 %v56_v40, %v51_v39 }
  0x92   :  { %v62_v43 = vsel %vm61_vm7, 1, %v266_v2 }
  0x93   :  { %v63_v45 = vadd.s32 %v62_v43, %v57_v42 }
  0x95   :  { %v66_v44 = vpop.permute.xlu1 %65 }
  0x96   :  { %vm67_vm8 = vcmp.eq.s32.totalorder %v66_v44, %v22_v26 }
  0x97   :  { %v68_v46 = vsel %vm67_vm8, 1, %v266_v2 }
  0x98   :  { %v69_v47 = vadd.s32 %v68_v46, %v63_v45 }
  0x9a   :  { %v70_v48 = vcvt.s32.f32 %v69_v47 }
  0x9c   :  { %204 = vmatmul.mubr.msk.f32.vlgmr.msra.gmra.mrb[0].mxu0 %vm71_vm9, %v70_v48 }
 0x16f   :  { %v141_v49 = vpop.f32.mrb[0].mxu0 }
 0x170   :  { %v145_v50 = vmul.f32 %v141_v49, %v141_v49  ;;  %v205_v51 = vpop.f32.mrb[1].mxu0 }
 0x172   :  { %v147_v52 = vsel %vm146_vm10, %v145_v50, 0.0 }
 0x173   :  { %148 = vadd.xlane.f32.xlu0 %v147_v52 }
 0x200   :  { %v149_v54 = vpop.xlane.xlu0 %148 }
 0x201   :  { %v150_v55 = vsub.f32 %v149_v54, %v141_v49 }
 0x203   :  { %v151_v56 = vmul.f32 0.5, %v150_v55 }
 0x205   :  { %154 = vperm.xlu1 %239, %v151_v56  }
 0x284   :  { %v155_v59 = vpop.permute.xlu1 %154 }
 0x285   :  { %v159_v60 = vrot.slane %v155_v59, %v158_v58 }
 0x287   :  { %162 = vst.msk [vmem:[#allocation2] sm:$0x1] %vm161_vm11, %v159_v60 }
 0x288   :  { %252 = shalt.err (!%p249_p4)
}
 0x289   :  { %s253_s3 = scalar_lea.hbm %s343_s2, 16 }
 0x28a   :  { %p254_p5 = scmp.ne.s32.totalorder %s343_s2, %s253_s3  ;;  %p257_p6 = scmp.lt.u32.totalorder %s253_s3, %s343_s2 }
 0x28c   :  { %p259_p7 = pnand %p257_p6, %p254_p5 }
 0x28e   :  { %262 = shalt.err (!%p259_p7)
}
 0x28f   :  { %172 = dma.vmem_to_hbm [thread:$0]  %s170_s26, 16, %s343_s2, [#allocation3]  }
 0x290   :  { %263 = dma.done.wait [#allocation3], 16  }
 0x291   :  { %264 = vsyncadd [#allocation3], 4294967280 }
 0x292   :  { %176 = vsyncpa [#allocation3], 1 }

</bundles_post_ra>
